<compile_context>
chip_gen: v7x
topology: tpu7x:2x2x1
jax: 0.10.0
libtpu: 0.0.40
codegen_flags: <defaults>
</compile_context>

<pallas_src>
import jax
import jax.numpy as jnp
from jax import lax
from jax.experimental import pallas as pl
from jax.experimental.pallas import tpu as pltpu

_BIG = float(jnp.finfo(jnp.float32).max)
_SMALL_C_UNROLL = 8  # direct (x - c_k)^2 path when num_classes <= this


def _make_kernel(margin, batch_size, num_classes):
    margin = float(margin)
    B = int(batch_size)
    C = int(num_classes)

    def kernel(x_ref, c_ref, t_ref, pen_ref, cn2_ref, out_ref, acc_ref):
        i = pl.program_id(0)
        nsteps = pl.num_programs(0)

        @pl.when(i == 0)
        def _init():
            acc_ref[...] = jnp.zeros_like(acc_ref)

        x = x_ref[...].astype(jnp.float32)     # (TB, D) f32 (upcast in-kernel)
        t = t_ref[...]                         # (TB, 1) int32 targets
        pen = pen_ref[...]                     # (1, C) 0 if class in batch else BIG

        TB, D = x.shape

        if C <= _SMALL_C_UNROLL:
            # Direct per-class squared distance: lane-dense (TB, 1)/(TB, D) work only.
            d2_ap = jnp.zeros((TB, 1), jnp.float32)
            d2_an = jnp.full((TB, 1), _BIG, jnp.float32)
            for k in range(C):
                ck = c_ref[pl.ds(k, 1), :].astype(jnp.float32)        # (1, D)
                diff = x - ck
                d2_k = jnp.maximum(jnp.sum(diff * diff, axis=1, keepdims=True),
                                   1e-12)                             # (TB, 1)
                own_k = t == k                                        # (TB, 1)
                d2_ap = d2_ap + jnp.where(own_k, d2_k, 0.0)
                cand_k = jnp.where(own_k, _BIG, d2_k) + pen[:, k:k + 1]
                d2_an = jnp.minimum(d2_an, cand_k)
        else:
            # MXU Gram path for many classes: d2 = ||x||^2 + ||c||^2 - 2 x.c^T
            c = c_ref[...].astype(jnp.float32)                        # (C, D)
            cn2 = cn2_ref[...]                                        # (1, C)
            xn2 = jnp.sum(x * x, axis=1, keepdims=True)               # (TB, 1)
            cross = lax.dot_general(x, c, (((1,), (1,)), ((), ())),
                                    preferred_element_type=jnp.float32,
                                    precision=lax.Precision.HIGHEST)  # (TB, C)
            d2 = jnp.maximum(xn2 + cn2 - 2.0 * cross, 1e-12)
            cls = lax.broadcasted_iota(jnp.int32, (TB, C), 1)
            own = t == cls
            # TODO(synk): out-of-range target ids give d2_ap = 0 silently instead of
            # the index error PyTorch would raise.
            d2_ap = jnp.sum(jnp.where(own, d2, 0.0), axis=1, keepdims=True)
            d2_an = jnp.min(jnp.where(own, _BIG, d2) + pen, axis=1, keepdims=True)

        dist_ap = jnp.sqrt(d2_ap)
        dist_an = jnp.sqrt(d2_an)

        # Mask rows added by batch padding.
        rows = i * TB + lax.broadcasted_iota(jnp.int32, (TB, 1), 0)
        valid = rows < B

        hinge = jnp.maximum(dist_ap - dist_an + margin, 0.0)
        loss_sum = jnp.sum(jnp.where(valid, hinge, 0.0))
        # TODO(synk): a sample with no negative class in the batch falls back to
        # dist_an = BIG (loss contribution 0, counted correct in prec) instead of the
        # runtime error PyTorch would raise.
        prec_sum = jnp.sum(jnp.where(jnp.logical_and(valid, dist_an > dist_ap),
                                     1.0, 0.0))

        lane = lax.broadcasted_iota(jnp.int32, (1, 2), 1)
        acc_ref[...] += jnp.where(lane == 0, loss_sum, prec_sum)

        @pl.when(i == nsteps - 1)
        def _finalize():
            out_ref[...] = acc_ref[...] * (1.0 / B)   # mean loss, prec fraction

    return kernel


def triplet_center_loss(inputs, targets, centers, margin=0.0, block_rows=512):
    """inputs: (B, D), targets: (B,) int, centers: (num_classes, D). Returns (loss, prec)."""
    B, D = inputs.shape
    C, Dc = centers.shape
    assert Dc == D

    targets = targets.astype(jnp.int32)

    # Batch tile: multiple of 8, capped at block_rows; pad batch to a whole grid.
    B8 = ((B + 7) // 8) * 8
    TB = max(8, min(B8, ((int(block_rows) + 7) // 8) * 8))
    G = (B + TB - 1) // TB
    B_pad = G * TB

    if B_pad != B:
        inputs_p = jnp.pad(inputs, ((0, B_pad - B), (0, 0)))
        targets_p = jnp.pad(targets, (0, B_pad - B), constant_values=-1)
    else:
        inputs_p, targets_p = inputs, targets
    t_col = targets_p.reshape(B_pad, 1)

    # Batch-global class presence (computed from the UNpadded targets) expressed as an
    # additive penalty: 0 for classes present in the batch, BIG for absent ones.
    class_ids = jnp.arange(C, dtype=jnp.int32)
    present = jnp.any(targets[None, :] == class_ids[:, None], axis=1)      # (C,)
    pen = jnp.where(present, 0.0, _BIG).astype(jnp.float32).reshape(1, C)

    # ||c||^2 precomputed once (only consumed by the large-C Gram path).
    cn2 = jnp.sum(centers.astype(jnp.float32) ** 2, axis=1).reshape(1, C)

    # VMEM budget: double-buffered input/target tiles + resident centers/pen/cn2 +
    # f32 working set; clamp to keep headroom on v7x (64 MiB physical VMEM).
    lanes_c = max(C, 128)
    need = (2 * (TB * D * inputs.dtype.itemsize + TB * 4)
            + C * D * centers.dtype.itemsize
            + 2 * lanes_c * 4
            + 2 * TB * D * 4
            + 6 * TB * lanes_c * 4
            + (2 << 20))
    vmem_limit = int(min(max(need, 16 * 1024 * 1024), 48 * 1024 * 1024))

    out = pl.pallas_call(
        _make_kernel(margin, B, C),
        out_shape=jax.ShapeDtypeStruct((1, 2), jnp.float32),
        grid_spec=pltpu.PrefetchScalarGridSpec(
            num_scalar_prefetch=0,
            grid=(G,),
            in_specs=[
                pl.BlockSpec((TB, D), lambda i: (i, 0)),   # inputs tile (native dtype)
                pl.BlockSpec((C, D), lambda i: (0, 0)),    # centers, VMEM-resident
                pl.BlockSpec((TB, 1), lambda i: (i, 0)),   # targets tile (int32 column)
                pl.BlockSpec((1, C), lambda i: (0, 0)),    # presence penalty, resident
                pl.BlockSpec((1, C), lambda i: (0, 0)),    # ||c||^2, resident
            ],
            out_specs=pl.BlockSpec((1, 2), lambda i: (0, 0)),
            scratch_shapes=[pltpu.VMEM((1, 2), jnp.float32)],   # [loss_sum, prec_count]
        ),
        compiler_params=pltpu.CompilerParams(
            dimension_semantics=("arbitrary",),   # batch axis carries the accumulator
            vmem_limit_bytes=vmem_limit,
        ),
    )(inputs_p, centers, t_col, pen, cn2)

    return out[0, 0], out[0, 1]


def _reference(inputs, targets, centers, margin=0.0):
    """Pure-JAX reference mirroring the PyTorch forward (for a sanity check)."""
    B = inputs.shape[0]
    cb = centers[targets]                                         # (B, D)
    d2 = jnp.sum((cb[None, :, :] - inputs[:, None, :]) ** 2, axis=2)
    dist = jnp.sqrt(jnp.maximum(d2, 1e-12))
    mask = targets[:, None] == targets[None, :]
    big = jnp.finfo(jnp.float32).max
    dist_ap = jnp.max(jnp.where(mask, dist, -big), axis=1)
    dist_an = jnp.min(jnp.where(mask, big, dist), axis=1)
    loss = jnp.mean(jnp.maximum(dist_ap - dist_an + margin, 0.0))
    prec = jnp.sum((dist_an > dist_ap).astype(jnp.float32)) / B
    return loss, prec


if __name__ == "__main__":
    key = jax.random.PRNGKey(0)
    k_centers, k_inputs, k_inputs2 = jax.random.split(key, 3)

    num_classes = 2
    feat_dim = 512          # fixed by nn.Parameter(torch.randn(num_classes, 512))
    margin = 0.0

    centers = jax.random.normal(k_centers, (num_classes, feat_dim), dtype=jnp.float32)

    # Case 1: single-tile batch (module's typical toy usage).
    inputs = jax.random.normal(k_inputs, (8, feat_dim), dtype=jnp.float32)
    targets = jnp.array([0, 1, 0, 1, 0, 1, 0, 1], dtype=jnp.int32)
    loss, prec = triplet_center_loss(inputs, targets, centers, margin=margin)
    jax.block_until_ready((loss, prec))
    ref_loss, ref_prec = _reference(inputs, targets, centers, margin=margin)
    assert abs(float(loss) - float(ref_loss)) < 1e-3, (float(loss), float(ref_loss))
    assert abs(float(prec) - float(ref_prec)) < 1e-6, (float(prec), float(ref_prec))

    # Case 2: multi-tile grid + batch padding (exercises the accumulator epilogue).
    inputs2 = jax.random.normal(k_inputs2, (11, feat_dim), dtype=jnp.float32)
    targets2 = jnp.array([0, 1, 0, 1, 0, 1, 0, 1, 1, 0, 1], dtype=jnp.int32)
    loss2, prec2 = triplet_center_loss(inputs2, targets2, centers,
                                       margin=margin, block_rows=8)
    jax.block_until_ready((loss2, prec2))
    ref_loss2, ref_prec2 = _reference(inputs2, targets2, centers, margin=margin)
    assert abs(float(loss2) - float(ref_loss2)) < 1e-3, (float(loss2), float(ref_loss2))
    assert abs(float(prec2) - float(ref_prec2)) < 1e-6, (float(prec2), float(ref_prec2))

    print("KERNEL_OK")
</pallas_src>

<mosaic_0001>
module attributes {stable_mosaic.version = 11 : i64} {
  func.func @kernel(%arg0: i32, %arg1: memref<8x512xf32, #tpu.memory_space<vmem>>, %arg2: memref<2x512xf32, #tpu.memory_space<vmem>>, %arg3: memref<8x1xi32, #tpu.memory_space<vmem>>, %arg4: memref<1x2xf32, #tpu.memory_space<vmem>>, %arg5: memref<1x2xf32, #tpu.memory_space<vmem>>, %arg6: memref<1x2xf32, #tpu.memory_space<vmem>>, %arg7: memref<1x2xf32, #tpu.memory_space<vmem>>) attributes {dimension_semantics = [#tpu.dimension_semantics<arbitrary>], iteration_bounds = array<i64: 1>, scalar_prefetch = 0 : i64, scratch_operands = 1 : i64, tpu.core_type = #tpu.core_type<tc>, window_params = [{transform_indices = @transform_0, window_bounds = array<i64: 8, 512>}, {pipeline_mode = #tpu.pipeline_mode<synchronous>, transform_indices = @transform_1, window_bounds = array<i64: 2, 512>}, {transform_indices = @transform_2, window_bounds = array<i64: 8, 1>}, {pipeline_mode = #tpu.pipeline_mode<synchronous>, transform_indices = @transform_3, window_bounds = array<i64: 1, 2>}, {pipeline_mode = #tpu.pipeline_mode<synchronous>, transform_indices = @transform_4, window_bounds = array<i64: 1, 2>}, {pipeline_mode = #tpu.pipeline_mode<synchronous>, transform_indices = @transform_5, window_bounds = array<i64: 1, 2>}]} {
    %c0_i32 = arith.constant 0 : i32
    %0 = arith.cmpi eq, %arg0, %c0_i32 : i32
    %1 = arith.extui %0 : i1 to i32
    %c0_i32_0 = arith.constant 0 : i32
    %2 = arith.cmpi ne, %1, %c0_i32_0 : i32
    scf.if %2 {
      %cst_34 = arith.constant 0.000000e+00 : f32
      %86 = vector.broadcast %cst_34 : f32 to vector<1x2xf32>
      %c0_35 = arith.constant 0 : index
      %c0_36 = arith.constant 0 : index
      %87 = vector.load %arg7[%c0_35, %c0_36] : memref<1x2xf32, #tpu.memory_space<vmem>>, vector<1x2xf32>
      tpu.vector_store %arg7[%c0_35, %c0_36], %86 {strides = array<i32>} : memref<1x2xf32, #tpu.memory_space<vmem>>, vector<1x2xf32>,
    } else {
    }
    %c0 = arith.constant 0 : index
    %c0_1 = arith.constant 0 : index
    %3 = vector.load %arg1[%c0, %c0_1] : memref<8x512xf32, #tpu.memory_space<vmem>>, vector<8x512xf32>
    %c0_2 = arith.constant 0 : index
    %c0_3 = arith.constant 0 : index
    %4 = vector.load %arg3[%c0_2, %c0_3] : memref<8x1xi32, #tpu.memory_space<vmem>>, vector<8x1xi32>
    %c0_4 = arith.constant 0 : index
    %c0_5 = arith.constant 0 : index
    %5 = vector.load %arg4[%c0_4, %c0_5] : memref<1x2xf32, #tpu.memory_space<vmem>>, vector<1x2xf32>
    %cst = arith.constant 0.000000e+00 : f32
    %6 = vector.broadcast %cst : f32 to vector<8x1xf32>
    %cst_6 = arith.constant 3.40282347E+38 : f32
    %7 = vector.broadcast %cst_6 : f32 to vector<8x1xf32>
    %c0_7 = arith.constant 0 : index
    %c0_8 = arith.constant 0 : index
    %8 = vector.load %arg2[%c0_7, %c0_8] : memref<2x512xf32, #tpu.memory_space<vmem>>, vector<1x512xf32>
    %9 = vector.broadcast %8 : vector<1x512xf32> to vector<8x512xf32>
    %10 = arith.subf %3, %9 : vector<8x512xf32>
    %11 = arith.mulf %10, %10 : vector<8x512xf32>
    %cst_9 = arith.constant dense<0.000000e+00> : vector<8xf32>
    %12 = vector.multi_reduction <add>, %11, %cst_9 [1] : vector<8x512xf32> to vector<8xf32>
    %13 = vector.shape_cast %12 : vector<8xf32> to vector<8x1xf32>
    %cst_10 = arith.constant 9.99999996E-13 : f32
    %14 = vector.broadcast %cst_10 : f32 to vector<8x1xf32>
    %15 = arith.maximumf %13, %14 : vector<8x1xf32>
    %c0_i32_11 = arith.constant 0 : i32
    %16 = vector.broadcast %c0_i32_11 : i32 to vector<8x1xi32>
    %17 = arith.cmpi eq, %4, %16 : vector<8x1xi32>
    %cst_12 = arith.constant 0.000000e+00 : f32
    %18 = vector.broadcast %cst_12 : f32 to vector<8x1xf32>
    %19 = arith.select %17, %15, %18 : vector<8x1xi1>, vector<8x1xf32>
    %20 = arith.addf %6, %19 : vector<8x1xf32>
    %cst_13 = arith.constant 3.40282347E+38 : f32
    %21 = vector.broadcast %cst_13 : f32 to vector<8x1xf32>
    %22 = arith.select %17, %21, %15 : vector<8x1xi1>, vector<8x1xf32>
    %23 = vector.extract_strided_slice %5 {offsets = [0, 0], sizes = [1, 1], strides = [1, 1]} : vector<1x2xf32> to vector<1x1xf32>
    %24 = vector.broadcast %23 : vector<1x1xf32> to vector<8x1xf32>
    %25 = arith.addf %22, %24 : vector<8x1xf32>
    %26 = arith.minimumf %7, %25 : vector<8x1xf32>
    %c1 = arith.constant 1 : index
    %c0_14 = arith.constant 0 : index
    %27 = vector.load %arg2[%c1, %c0_14] : memref<2x512xf32, #tpu.memory_space<vmem>>, vector<1x512xf32>
    %28 = vector.broadcast %27 : vector<1x512xf32> to vector<8x512xf32>
    %29 = arith.subf %3, %28 : vector<8x512xf32>
    %30 = arith.mulf %29, %29 : vector<8x512xf32>
    %cst_15 = arith.constant dense<0.000000e+00> : vector<8xf32>
    %31 = vector.multi_reduction <add>, %30, %cst_15 [1] : vector<8x512xf32> to vector<8xf32>
    %32 = vector.shape_cast %31 : vector<8xf32> to vector<8x1xf32>
    %cst_16 = arith.constant 9.99999996E-13 : f32
    %33 = vector.broadcast %cst_16 : f32 to vector<8x1xf32>
    %34 = arith.maximumf %32, %33 : vector<8x1xf32>
    %c1_i32 = arith.constant 1 : i32
    %35 = vector.broadcast %c1_i32 : i32 to vector<8x1xi32>
    %36 = arith.cmpi eq, %4, %35 : vector<8x1xi32>
    %cst_17 = arith.constant 0.000000e+00 : f32
    %37 = vector.broadcast %cst_17 : f32 to vector<8x1xf32>
    %38 = arith.select %36, %34, %37 : vector<8x1xi1>, vector<8x1xf32>
    %39 = arith.addf %20, %38 : vector<8x1xf32>
    %cst_18 = arith.constant 3.40282347E+38 : f32
    %40 = vector.broadcast %cst_18 : f32 to vector<8x1xf32>
    %41 = arith.select %36, %40, %34 : vector<8x1xi1>, vector<8x1xf32>
    %42 = vector.extract_strided_slice %5 {offsets = [0, 1], sizes = [1, 1], strides = [1, 1]} : vector<1x2xf32> to vector<1x1xf32>
    %43 = vector.broadcast %42 : vector<1x1xf32> to vector<8x1xf32>
    %44 = arith.addf %41, %43 : vector<8x1xf32>
    %45 = arith.minimumf %26, %44 : vector<8x1xf32>
    %46 = math.sqrt %39 : vector<8x1xf32>
    %47 = math.sqrt %45 : vector<8x1xf32>
    %c8_i32 = arith.constant 8 : i32
    %48 = arith.muli %arg0, %c8_i32 : i32
    %49 = tpu.iota {dimensions = array<i32: 0>} : vector<8x1xi32>
    %50 = vector.broadcast %48 : i32 to vector<8x1xi32>
    %51 = arith.addi %50, %49 : vector<8x1xi32>
    %c8_i32_19 = arith.constant 8 : i32
    %52 = vector.broadcast %c8_i32_19 : i32 to vector<8x1xi32>
    %53 = arith.cmpi slt, %51, %52 : vector<8x1xi32>
    %54 = arith.subf %46, %47 : vector<8x1xf32>
    %cst_20 = arith.constant 0.000000e+00 : f32
    %55 = vector.broadcast %cst_20 : f32 to vector<8x1xf32>
    %56 = arith.addf %54, %55 : vector<8x1xf32>
    %cst_21 = arith.constant 0.000000e+00 : f32
    %57 = vector.broadcast %cst_21 : f32 to vector<8x1xf32>
    %58 = arith.maximumf %56, %57 : vector<8x1xf32>
    %cst_22 = arith.constant 0.000000e+00 : f32
    %59 = vector.broadcast %cst_22 : f32 to vector<8x1xf32>
    %60 = arith.select %53, %58, %59 : vector<8x1xi1>, vector<8x1xf32>
    %61 = vector.shape_cast %60 : vector<8x1xf32> to vector<1x8x1xf32>
    %cst_23 = arith.constant dense<0.000000e+00> : vector<1xf32>
    %62 = vector.multi_reduction <add>, %61, %cst_23 [1, 2] : vector<1x8x1xf32> to vector<1xf32>
    %63 = vector.shape_cast %62 : vector<1xf32> to vector<1x1x1xf32>
    %64 = vector.extract %63[0, 0, 0] : f32 from vector<1x1x1xf32>
    %65 = arith.cmpf ogt, %47, %46 : vector<8x1xf32>
    %66 = arith.andi %53, %65 : vector<8x1xi1>
    %cst_24 = arith.constant 1.000000e+00 : f32
    %cst_25 = arith.constant 0.000000e+00 : f32
    %67 = vector.broadcast %cst_24 : f32 to vector<8x1xf32>
    %68 = vector.broadcast %cst_25 : f32 to vector<8x1xf32>
    %69 = arith.select %66, %67, %68 : vector<8x1xi1>, vector<8x1xf32>
    %70 = vector.shape_cast %69 : vector<8x1xf32> to vector<1x8x1xf32>
    %cst_26 = arith.constant dense<0.000000e+00> : vector<1xf32>
    %71 = vector.multi_reduction <add>, %70, %cst_26 [1, 2] : vector<1x8x1xf32> to vector<1xf32>
    %72 = vector.shape_cast %71 : vector<1xf32> to vector<1x1x1xf32>
    %73 = vector.extract %72[0, 0, 0] : f32 from vector<1x1x1xf32>
    %74 = tpu.iota {dimensions = array<i32: 1>} : vector<1x2xi32>
    %c0_27 = arith.constant 0 : index
    %c0_28 = arith.constant 0 : index
    %75 = vector.load %arg7[%c0_27, %c0_28] : memref<1x2xf32, #tpu.memory_space<vmem>>, vector<1x2xf32>
    %c0_i32_29 = arith.constant 0 : i32
    %76 = vector.broadcast %c0_i32_29 : i32 to vector<1x2xi32>
    %77 = arith.cmpi eq, %74, %76 : vector<1x2xi32>
    %78 = vector.broadcast %64 : f32 to vector<1x2xf32>
    %79 = vector.broadcast %73 : f32 to vector<1x2xf32>
    %80 = arith.select %77, %78, %79 : vector<1x2xi1>, vector<1x2xf32>
    %81 = arith.addf %75, %80 : vector<1x2xf32>
    %c0_30 = arith.constant 0 : index
    %c0_31 = arith.constant 0 : index
    %82 = vector.load %arg7[%c0_30, %c0_31] : memref<1x2xf32, #tpu.memory_space<vmem>>, vector<1x2xf32>
    tpu.vector_store %arg7[%c0_30, %c0_31], %81 {strides = array<i32>} : memref<1x2xf32, #tpu.memory_space<vmem>>, vector<1x2xf32>,
    %c0_i32_32 = arith.constant 0 : i32
    %83 = arith.cmpi eq, %arg0, %c0_i32_32 : i32
    %84 = arith.extui %83 : i1 to i32
    %c0_i32_33 = arith.constant 0 : i32
    %85 = arith.cmpi ne, %84, %c0_i32_33 : i32
    scf.if %85 {
      %c0_34 = arith.constant 0 : index
      %c0_35 = arith.constant 0 : index
      %86 = vector.load %arg7[%c0_34, %c0_35] : memref<1x2xf32, #tpu.memory_space<vmem>>, vector<1x2xf32>
      %cst_36 = arith.constant 1.250000e-01 : f32
      %87 = vector.broadcast %cst_36 : f32 to vector<1x2xf32>
      %88 = arith.mulf %86, %87 : vector<1x2xf32>
      %c0_37 = arith.constant 0 : index
      %c0_38 = arith.constant 0 : index
      %89 = vector.load %arg6[%c0_37, %c0_38] : memref<1x2xf32, #tpu.memory_space<vmem>>, vector<1x2xf32>
      tpu.vector_store %arg6[%c0_37, %c0_38], %88 {strides = array<i32>} : memref<1x2xf32, #tpu.memory_space<vmem>>, vector<1x2xf32>,
    } else {
    }
    return
  }
  func.func @transform_0(%arg0: i32) -> (i32, i32) {
    %c0_i32 = arith.constant 0 : i32
    %c0_i32_0 = arith.constant 0 : i32
    return %arg0, %c0_i32 : i32, i32
  }
  func.func @transform_1(%arg0: i32) -> (i32, i32) {
    %c0_i32 = arith.constant 0 : i32
    %c0_i32_0 = arith.constant 0 : i32
    %c0_i32_1 = arith.constant 0 : i32
    return %c0_i32, %c0_i32_0 : i32, i32
  }
  func.func @transform_2(%arg0: i32) -> (i32, i32) {
    %c0_i32 = arith.constant 0 : i32
    %c0_i32_0 = arith.constant 0 : i32
    return %arg0, %c0_i32 : i32, i32
  }
  func.func @transform_3(%arg0: i32) -> (i32, i32) {
    %c0_i32 = arith.constant 0 : i32
    %c0_i32_0 = arith.constant 0 : i32
    %c0_i32_1 = arith.constant 0 : i32
    return %c0_i32, %c0_i32_0 : i32, i32
  }
  func.func @transform_4(%arg0: i32) -> (i32, i32) {
    %c0_i32 = arith.constant 0 : i32
    %c0_i32_0 = arith.constant 0 : i32
    %c0_i32_1 = arith.constant 0 : i32
    return %c0_i32, %c0_i32_0 : i32, i32
  }
  func.func @transform_5(%arg0: i32) -> (i32, i32) {
    %c0_i32 = arith.constant 0 : i32
    %c0_i32_0 = arith.constant 0 : i32
    %c0_i32_1 = arith.constant 0 : i32
    return %c0_i32, %c0_i32_0 : i32, i32
  }
}

</mosaic_0001>

<bundles_post_ra>
// kernel: tpu_custom_call.1
= control target key start
LH: loop header
LB: loop body
LE: loop exit
PB: predicated region body
PF: predicated region fallthrough
CT: control target
= control target key end

     0   :  { %10 = vsyncpa [#allocation4], 0  ;;  %s355_s0 = inlined_call_operand.hbm [shape: f32[8,512], index: 0, kind: input, shape index: {}]   ;;  %s356_s1 = inlined_call_operand.vmem [shape: f32[2,512], index: 1, kind: input, shape index: {}]   ;;  %s357_s2 = inlined_call_operand.vmem [shape: s32[8,1], index: 2, kind: input, shape index: {}]   ;;  %s358_s3 = inlined_call_operand.vmem [shape: f32[1,2], index: 3, kind: input, shape index: {}]   ;;  %s359_s4 = inlined_call_operand.vmem [shape: f32[1,2], index: 4, kind: input, shape index: {}]   ;;  %s360_s5 = inlined_call_operand.hbm [shape: f32[1,2], index: 5, kind: output, shape index: {}]  }
   0x1   :  { %11 = vsyncpa [#allocation5], 0  ;;  %s280_s18 = smov [#allocation3]   ;;  %s232_s22 = scalar_lea.hbm %s355_s0, 512 }
   0x2   :  { %s18_s19 = sshll.u32 %s280_s18, 4  ;;  %p233_p0 = scmp.ne.s32.totalorder %s355_s0, %s232_s22  ;;  %s19_s19 = int_to_ptr.vmem [resolvable:$true] %s18_s19 }
   0x3   :  { %p236_p1 = scmp.lt.u32.totalorder %s232_s22, %s355_s0 }
   0x5   :  { %p238_p2 = pnand %p236_p1, %p233_p0 }
   0x7   :  { %241 = shalt.err (!%p238_p2)
}
   0x8   :  { %s242_s4 = scalar_lea.vmem %s19_s19, 512  ;;  %p247_p4 = scmp.lt.s32.totalorder %s19_s19, %s19_s19 }
   0x9   :  { %p243_p3 = scmp.ne.s32.totalorder %s19_s19, %s242_s4  ;;  %p248_p5 = scmp.lt.s32.totalorder %s242_s4, %s242_s4 }
   0xb   :  { %p249_p6 = por %p248_p5, %p247_p4 }
   0xd   :  { %p250_p7 = pnand %p249_p6, %p243_p3 }
   0xf   :  { %253 = shalt.err (!%p250_p7)
}
  0x10   :  { %21 = dma.hbm_to_vmem [thread:$0]  %s355_s0, 512, %s19_s19, [#allocation4]  }
  0x11   :  { %276 = dma.done.wait [#allocation4], 512  }
  0x12   :  { %277 = vsyncadd [#allocation4], 4294966784  ;;  %v47_v0 = vlaneseq  ;;  %v39_v6 = vld [vmem:[#allocation3] sm:$0xff]  ;;  %v40_v7 = vld [vmem:[#allocation3 + $0x8] sm:$0xff]  ;;  %s281_s9 = smov 127   ;;  %vm163_vm6 = vcmask 7168  }
  0x13   :  { %v41_v8 = vld [vmem:[#allocation3 + $0x10] sm:$0xff]  ;;  %v42_v9 = vld [vmem:[#allocation3 + $0x18] sm:$0xff]  ;;  %v219_v16 = vld [vmem:[%s356_s1 + $0x1] ss:$2 sm:$0xf]  ;;  %vm37_vm8 = vcmask 8192  }
  0x14   :  { %v48_v1 = vshrl.u32 %v47_v0, 7  ;;  %v45_v10 = vld [vmem:[%s356_s1] ss:$2 sm:$0xf]  ;;  %s283_s11 = smov [#allocation6]  }
  0x15   :  { %v218_v11 = vld [vmem:[%s358_s3] ss:$0 sm:$0xff]  ;;  %s209_s12 = sshll.u32 %s283_s11, 4  ;;  %s210_s12 = int_to_ptr.vmem [resolvable:$true] %s209_s12 }
  0x16   :  { %v49_v2 = vsub.s32 0, %v48_v1  ;;  %v53_v3 = vsub.s32 1, %v48_v1  ;;  %v57_v4 = vsub.s32 2, %v48_v1  ;;  %v61_v5 = vsub.s32 3, %v48_v1  ;;  %134 = vrot.lane.b32.xlu1 %v218_v11, %s281_s9  ;;  %v43_v43 = vld [vmem:[%s357_s2] sm:$0xff]  ;;  %s254_s13 = scalar_lea.vmem %s210_s12, 16  ;;  %p259_p9 = scmp.lt.s32.totalorder %s210_s12, %s210_s12 }
  0x17   :  { %vm81_vm0 = vcmp.eq.s32.totalorder %v43_v43, 0  ;;  %vm130_vm1 = vcmp.eq.s32.totalorder %v43_v43, 1  ;;  %p255_p8 = scmp.ne.s32.totalorder %s210_s12, %s254_s13  ;;  %s258_s14 = scalar_lea.vmem %s210_s12, 32 }
  0x18   :  { %v50_v12 = vrot.slane %v45_v10, %v49_v2  ;;  %v54_v13 = vrot.slane %v45_v10, %v53_v3  ;;  %v58_v14 = vrot.slane %v45_v10, %v57_v4  ;;  %v62_v15 = vrot.slane %v45_v10, %v61_v5  ;;  %p260_p10 = scmp.lt.s32.totalorder %s258_s14, %s254_s13 }
  0x19   :  { %v99_v17 = vrot.slane %v219_v16, %v49_v2  ;;  %v103_v18 = vrot.slane %v219_v16, %v53_v3  ;;  %v107_v19 = vrot.slane %v219_v16, %v57_v4  ;;  %v111_v20 = vrot.slane %v219_v16, %v61_v5 }
  0x1a   :  { %v67_v21 = vsub.f32 %v39_v6, %v50_v12  ;;  %v68_v22 = vsub.f32 %v40_v7, %v54_v13  ;;  %v69_v23 = vsub.f32 %v41_v8, %v58_v14  ;;  %v70_v24 = vsub.f32 %v42_v9, %v62_v15  ;;  %p261_p11 = por %p260_p10, %p259_p9 }
  0x1b   :  { %v116_v25 = vsub.f32 %v39_v6, %v99_v17  ;;  %v117_v26 = vsub.f32 %v40_v7, %v103_v18  ;;  %v118_v27 = vsub.f32 %v41_v8, %v107_v19  ;;  %v119_v31 = vsub.f32 %v42_v9, %v111_v20 }
  0x1c   :  { %v71_v28 = vmul.f32 %v67_v21, %v67_v21  ;;  %v72_v29 = vmul.f32 %v68_v22, %v68_v22  ;;  %v73_v30 = vmul.f32 %v69_v23, %v69_v23  ;;  %v74_v35 = vmul.f32 %v70_v24, %v70_v24  ;;  %p262_p12 = pnand %p261_p11, %p255_p8 }
  0x1d   :  { %v120_v32 = vmul.f32 %v116_v25, %v116_v25  ;;  %v121_v33 = vmul.f32 %v117_v26, %v117_v26  ;;  %v122_v34 = vmul.f32 %v118_v27, %v118_v27  ;;  %v123_v39 = vmul.f32 %v119_v31, %v119_v31 }
  0x1e   :  { %v75_v36 = vadd.f32 %v72_v29, %v71_v28  ;;  %v282_v6 = vmov 0.0   ;;  %v188_v25 = vand.u32 127, %v47_v0 }
  0x1f   :  { %v124_v37 = vadd.f32 %v121_v33, %v120_v32  ;;  %38 = vst.msk [vmem:[#allocation2] sm:$0x1] %vm37_vm8, %v282_v6 }
  0x20   :  { %v76_v38 = vadd.f32 %v75_v36, %v73_v30  ;;  %vm190_vm9 = vcmp.eq.s32.totalorder %v188_v25, 0 }
  0x21   :  { %v125_v40 = vadd.f32 %v124_v37, %v122_v34 }
  0x22   :  { %v77_v41 = vadd.f32 %v76_v38, %v74_v35 }
  0x23   :  { %v126_v42 = vadd.f32 %v125_v40, %v123_v39 }
  0x24   :  { %78 = vadd.xlane.f32.xlu0 %v77_v41 }
  0x26   :  { %v189_v27 = vld [vmem:[#allocation2] sm:$0x1] }
  0x28   :  { %127 = vadd.xlane.f32.xlu0 %v126_v42 }
  0x88   :  { %v135_v50 = vpop.permute.xlu1 %134 }
  0xb1   :  { %v79_v44 = vpop.xlane.xlu0 %78 }
  0xb2   :  { %v80_v45 = vmax.f32 %v79_v44, 1e-12 }
  0xb4   :  { %v84_v46 = vsel %vm81_vm0, 3.4028235e+38, %v80_v45  ;;  %v82_v51 = vsel %vm81_vm0, %v80_v45, 0.0 }
  0xb5   :  { %v91_v47 = vadd.f32 %v218_v11, %v84_v46  ;;  %v128_v48 = vpop.xlane.xlu0 %127 }
  0xb6   :  { %v129_v49 = vmax.f32 %v128_v48, 1e-12 }
  0xb7   :  { %v92_v54 = vmin.f32 %v91_v47, 3.4028235e+38 }
  0xb8   :  { %v131_v52 = vsel %vm130_vm1, %v129_v49, 0.0  ;;  %v133_v53 = vsel %vm130_vm1, 3.4028235e+38, %v129_v49 }
  0xb9   :  { %v132_v55 = vadd.f32 %v131_v52, %v82_v51  ;;  %v137_v56 = vadd.f32 %v135_v50, %v133_v53 }
  0xbb   :  { %v138_v57 = vmin.f32 %v92_v54, %v137_v56  ;;  %228 = vrsqrt.f32 %v132_v55  ;;  %vm141_vm2 = vcmp.eq.f32.partialorder %v132_v55, inf  ;;  %v144_v63 = vand.u32 2147483648, %v132_v55 }
  0xbc   :  { %vm143_vm4 = vcmp.eq.f32.partialorder %v132_v55, 0.0 }
  0xbd   :  { %230 = vrsqrt.f32 %v138_v57  ;;  %vm148_vm3 = vcmp.eq.f32.partialorder %v138_v57, inf  ;;  %v151_v1 = vand.u32 2147483648, %v138_v57  ;;  %vm150_vm5 = vcmp.eq.f32.partialorder %v138_v57, 0.0 }
  0xc5   :  { %v229_v58 = vpop.eup %228 }
  0xc6   :  { %v140_v59 = vmul.f32 %v229_v58, %v132_v55 }
  0xc7   :  { %v231_v60 = vpop.eup %230 }
  0xc8   :  { %v142_v61 = vsel %vm141_vm2, %v132_v55, %v140_v59  ;;  %v147_v62 = vmul.f32 %v231_v60, %v138_v57 }
  0xc9   :  { %v145_v3 = vsel %vm143_vm4, %v144_v63, %v142_v61 }
  0xca   :  { %v149_v2 = vsel %vm148_vm3, %v138_v57, %v147_v62 }
  0xcb   :  { %v152_v4 = vsel %vm150_vm5, %v151_v1, %v149_v2 }
  0xcc   :  { %vm174_vm7 = vcmp.gt.f32.partialorder %v152_v4, %v145_v3  ;;  %v159_v5 = vsub.f32 %v145_v3, %v152_v4 }
  0xcd   :  { %v176_v7 = vsel %vm174_vm7, 1.0, %v282_v6 }
  0xce   :  { %v177_v8 = vsel %vm163_vm6, %v176_v7, 0.0  ;;  %v161_v9 = vmax.f32 %v159_v5, 0.0 }
  0xcf   :  { %178 = vadd.xlane.f32.xlu0 %v177_v8 }
  0xd0   :  { %v164_v10 = vsel %vm163_vm6, %v161_v9, 0.0 }
  0xd1   :  { %165 = vadd.xlane.f32.xlu1 %v164_v10 }
 0x15c   :  { %v179_v11 = vpop.xlane.xlu0 %178 }
 0x15d   :  { %v180_v12 = vrot.slane %v179_v11, 4 }
 0x15e   :  { %v166_v13 = vpop.xlane.xlu1 %165 }
 0x15f   :  { %v181_v14 = vadd.f32 %v180_v12, %v179_v11  ;;  %v167_v15 = vrot.slane %v166_v13, 4 }
 0x161   :  { %v182_v16 = vrot.slane %v181_v14, 2  ;;  %v168_v17 = vadd.f32 %v167_v15, %v166_v13 }
 0x163   :  { %v183_v18 = vadd.f32 %v182_v16, %v181_v14  ;;  %v169_v19 = vrot.slane %v168_v17, 2 }
 0x165   :  { %v170_v20 = vadd.f32 %v169_v19, %v168_v17  ;;  %v184_v21 = vrot.slane %v183_v18, 1 }
 0x167   :  { %v171_v22 = vrot.slane %v170_v20, 1  ;;  %v185_v24 = vadd.f32 %v184_v21, %v183_v18 }
 0x169   :  { %v172_v23 = vadd.f32 %v171_v22, %v170_v20 }
 0x16b   :  { %220 = vpush %v172_v23 }
 0x16c   :  { %222 = vpush %v185_v24 }
 0x19c   :  { %s221_s2 = spop %220 }
 0x19d   :  { %v191_v26 = vstv %s221_s2  ;;  %s223_s10 = spop %222 }
 0x19e   :  { %v192_v28 = vstv %s223_s10 }
 0x19f   :  { %v193_v29 = vsel %vm190_vm9, %v191_v26, %v192_v28 }
 0x1a0   :  { %v194_v30 = vadd.f32 %v193_v29, %v189_v27 }
 0x1a2   :  { %196 = vst.msk [vmem:[#allocation2] sm:$0x1] %vm37_vm8, %v194_v30 }
 0x1a9   :  { %v200_v31 = vld [vmem:[#allocation2] sm:$0x1] }
 0x1aa   :  { %v201_v32 = vmul.f32 0.125, %v200_v31 }
 0x1ac   :  { %202 = vst.msk [vmem:[#allocation6] sm:$0x1] %vm37_vm8, %v201_v32 }
 0x1ad   :  { %265 = shalt.err (!%p262_p12)
}
 0x1ae   :  { %s266_s17 = scalar_lea.hbm %s360_s5, 16 }
 0x1af   :  { %p267_p13 = scmp.ne.s32.totalorder %s360_s5, %s266_s17  ;;  %p270_p0 = scmp.lt.u32.totalorder %s266_s17, %s360_s5 }
 0x1b1   :  { %p272_p1 = pnand %p270_p0, %p267_p13 }
 0x1b3   :  { %275 = shalt.err (!%p272_p1)
}
 0x1b4   :  { %212 = dma.vmem_to_hbm [thread:$0]  %s210_s12, 16, %s360_s5, [#allocation5]  }
 0x1b5   :  { %278 = dma.done.wait [#allocation5], 16  }
 0x1b6   :  { %279 = vsyncadd [#allocation5], 4294967280 }
 0x1b7   :  { %216 = vsyncpa [#allocation4], 1 }
 0x1b8   :  { %217 = vsyncpa [#allocation5], 1 }

</bundles_post_ra>
